<compile_context>
chip_gen: v7x
topology: tpu7x:2x2x1
jax: 0.10.0
libtpu: 0.0.40
codegen_flags: <defaults>
</compile_context>

<pallas_src>
import functools

import jax
import jax.numpy as jnp
from jax import lax
from jax.experimental import pallas as pl
from jax.experimental.pallas import tpu as pltpu


def _fused_embed_kernel(tgt_ref, tbl_ref, out_ref):
    # tgt_ref: (bn, F*C) int32  -- target[n, j] = j that should fire for row n
    # tbl_ref: (F*C, F*E) f32   -- block-diagonal embedding table (VMEM-resident)
    # out_ref: (bn, F*E) f32    -- lane-dense output slab
    tgt = tgt_ref[...]
    lane = lax.broadcasted_iota(jnp.int32, tgt.shape, 1)
    onehot = (tgt == lane).astype(jnp.float32)                 # (bn, F*C)
    out_ref[...] = jnp.dot(
        onehot, tbl_ref[...], preferred_element_type=jnp.float32
    ).astype(out_ref.dtype)


def categorical_embedding_forward(X, tables, time_code, *, block_n=512):
    """X: (N, total_features) int, tables: (total_features, C, E) float32.

    Returns (N, F, 1, E) with F = len(time_code[0]), matching
    torch.stack([Embedding_t(X[:, t].unsqueeze(1)) for t in time_code[0]], 1).
    """
    if any(len(ts) > 0 for ts in time_code[1:]):
        # See TODO(synk) above: original torch forward is ill-defined here.
        raise ValueError(
            "non-empty time_code[1:] is not supported (undefined in source module)")

    feats = jnp.asarray(list(time_code[0]), dtype=jnp.int32)   # (F,)
    N = X.shape[0]
    F = int(feats.shape[0])
    C, E = int(tables.shape[1]), int(tables.shape[2])
    FC, FE = F * C, F * E

    # ---- small, one-time glue (independent of N or only O(N*F*C) int32) ----
    # Block-diagonal table: rows [f*C,(f+1)*C) x cols [f*E,(f+1)*E) = table f.
    tbl_sel = tables[feats].astype(jnp.float32)                # (F, C, E)
    bd_tbl = jax.scipy.linalg.block_diag(*[tbl_sel[f] for f in range(F)])  # (F*C, F*E)

    # target[n, f*C + c] = f*C + X[n, feats[f]]  (same value repeated C times)
    flat = X[:, feats].astype(jnp.int32) + (jnp.arange(F, dtype=jnp.int32) * C)[None, :]
    target = jnp.repeat(flat, C, axis=1)                       # (N, F*C)

    # ---- batch tiling: pad N to a multiple of the tile, padded rows -> -1 ----
    bn = block_n if N >= block_n else max(8, ((N + 7) // 8) * 8)
    n_pad = (-N) % bn
    if n_pad:
        target = jnp.concatenate(
            [target, jnp.full((n_pad, FC), -1, dtype=jnp.int32)], axis=0)
    Np = N + n_pad

    out = pl.pallas_call(
        _fused_embed_kernel,
        out_shape=jax.ShapeDtypeStruct((Np, FE), jnp.float32),
        grid=(pl.cdiv(Np, bn),),
        in_specs=[
            pl.BlockSpec((bn, FC), lambda i: (i, 0)),
            pl.BlockSpec((FC, FE), lambda i: (0, 0)),   # constant -> stays in VMEM
        ],
        out_specs=pl.BlockSpec((bn, FE), lambda i: (i, 0)),
        compiler_params=pltpu.CompilerParams(
            dimension_semantics=("parallel",)),
    )(target, bd_tbl)                                          # (Np, F*E)

    # Row-major (N, F*E) -> (N, F, 1, E) is a pure reshape (no transpose).
    return out[:N].reshape(N, F, 1, E)


if __name__ == "__main__":
    key = jax.random.PRNGKey(0)

    # Small shapes consistent with the module defaults:
    N = 8                  # batch
    dim_embedding = 32     # E
    dim_feature = 2        # categories per feature (module default)
    time_code = [[0, 1, 2, 3], []]                      # only time_code[0] is well-defined
    total_features = len(time_code[0]) + len(time_code[1])   # 4

    k_tbl, k_x = jax.random.split(key)
    # nn.Embedding default init ~ N(0, 1), deterministic here via PRNGKey(0).
    tables = jax.random.normal(
        k_tbl, (total_features, dim_feature, dim_embedding), dtype=jnp.float32)
    X = jax.random.randint(
        k_x, (N, total_features), 0, dim_feature, dtype=jnp.int32)

    fwd = jax.jit(functools.partial(categorical_embedding_forward,
                                    time_code=time_code))
    out = jax.block_until_ready(fwd(X, tables))

    # Pure-JAX reference of the torch forward semantics.
    ref = jnp.stack(
        [tables[t][X[:, t]][:, None, :] for t in time_code[0]], axis=1)

    assert out.shape == (N, len(time_code[0]), 1, dim_embedding), out.shape
    assert jnp.allclose(out, ref, atol=1e-5), "mismatch vs reference"
    print("KERNEL_OK")
</pallas_src>

<mosaic_0001>
module attributes {stable_mosaic.version = 11 : i64} {
  func.func @_fused_embed_kernel(%arg0: i32, %arg1: memref<8x8xi32, #tpu.memory_space<vmem>>, %arg2: memref<8x128xf32, #tpu.memory_space<vmem>>, %arg3: memref<8x128xf32, #tpu.memory_space<vmem>>) attributes {dimension_semantics = [#tpu.dimension_semantics<parallel>], iteration_bounds = array<i64: 1>, scalar_prefetch = 0 : i64, scratch_operands = 0 : i64, tpu.core_type = #tpu.core_type<tc>, window_params = [{transform_indices = @transform_0, window_bounds = array<i64: 8, 8>}, {pipeline_mode = #tpu.pipeline_mode<synchronous>, transform_indices = @transform_1, window_bounds = array<i64: 8, 128>}, {transform_indices = @transform_2, window_bounds = array<i64: 8, 128>}]} {
    %c0 = arith.constant 0 : index
    %c0_0 = arith.constant 0 : index
    %0 = vector.load %arg1[%c0, %c0_0] : memref<8x8xi32, #tpu.memory_space<vmem>>, vector<8x8xi32>
    %1 = tpu.iota {dimensions = array<i32: 1>} : vector<8x8xi32>
    %2 = arith.cmpi eq, %0, %1 : vector<8x8xi32>
    %3 = arith.extui %2 : vector<8x8xi1> to vector<8x8xi32>
    %4 = arith.sitofp %3 : vector<8x8xi32> to vector<8x8xf32>
    %c0_1 = arith.constant 0 : index
    %c0_2 = arith.constant 0 : index
    %5 = vector.load %arg2[%c0_1, %c0_2] : memref<8x128xf32, #tpu.memory_space<vmem>>, vector<8x128xf32>
    %cst = arith.constant dense<0.000000e+00> : vector<8x128xf32>
    %6 = tpu.matmul %4, %5, %cst {dimension_numbers = #tpu.dot_dimension_numbers<[1], [0], [0], [1], [0, 0, 1, 1], [], []>} : vector<8x8xf32>, vector<8x128xf32>, vector<8x128xf32> -> vector<8x128xf32>
    %c0_3 = arith.constant 0 : index
    %c0_4 = arith.constant 0 : index
    %7 = vector.load %arg3[%c0_3, %c0_4] : memref<8x128xf32, #tpu.memory_space<vmem>>, vector<8x128xf32>
    tpu.vector_store %arg3[%c0_3, %c0_4], %6 {strides = array<i32>} : memref<8x128xf32, #tpu.memory_space<vmem>>, vector<8x128xf32>,
    return
  }
  func.func @transform_0(%arg0: i32) -> (i32, i32) {
    %c0_i32 = arith.constant 0 : i32
    %c0_i32_0 = arith.constant 0 : i32
    return %arg0, %c0_i32 : i32, i32
  }
  func.func @transform_1(%arg0: i32) -> (i32, i32) {
    %c0_i32 = arith.constant 0 : i32
    %c0_i32_0 = arith.constant 0 : i32
    %c0_i32_1 = arith.constant 0 : i32
    return %c0_i32, %c0_i32_0 : i32, i32
  }
  func.func @transform_2(%arg0: i32) -> (i32, i32) {
    %c0_i32 = arith.constant 0 : i32
    %c0_i32_0 = arith.constant 0 : i32
    return %arg0, %c0_i32 : i32, i32
  }
}

</mosaic_0001>

<bundles_post_ra>
// kernel: categorical_embedding_forward.1
= control target key start
LH: loop header
LB: loop body
LE: loop exit
PB: predicated region body
PF: predicated region fallthrough
CT: control target
= control target key end

     0   :  { %v12_v0 = vlaneseq  ;;  %v108_v1 = vmov 0.0   ;;  %vm109_vm0 = vmmov 0   ;;  %vm18_vm1 = vcmask 64512   ;;  %s134_s1 = inlined_call_operand.vmem [shape: f32[8,128], index: 1, kind: input, shape index: {}]   ;;  %s135_s0 = inlined_call_operand.vmem [shape: s32[8,8], index: 0, kind: input, shape index: {}]   ;;  %s136_s2 = inlined_call_operand.vmem [shape: f32[8,128], index: 2, kind: output, shape index: {}]  }
   0x1   :  { %101 = vmatprep.subr.mxu0 %v108_v1  ;;  %v17_v2 = vld [vmem:[%s134_s1] sm:$0xff]  ;;  %103 = vmatprep.mubr.msk.f32.mxu0 %vm109_vm0, %v108_v1 }
   0x2   :  { %v11_v3 = vld [vmem:[%s135_s0] sm:$0xff]  ;;  %102 = vmatpush3.msra.mxu0 %v17_v2  ;;  %v13_v4 = vand.u32 127, %v12_v0 }
   0x4   :  { %vm14_vm2 = vcmp.eq.s32.totalorder %v11_v3, %v13_v4 }
   0x5   :  { %v97_v5 = vsel %vm14_vm2, 1.0, %v108_v1 }
   0x6   :  { %104 = vmatmul.mubr.msk.f32.vlgmr.msra.gmra.mrb[0].mxu0 %vm18_vm1, %v97_v5 }
  0xd9   :  { %v88_v6 = vpop.f32.mrb[0].mxu0 }
  0xda   :  { %92 = vst [vmem:[%s136_s2] sm:$0xff] %v88_v6  ;;  %v105_v7 = vpop.f32.mrb[1].mxu0 }

</bundles_post_ra>
